<compile_context>
chip_gen: v6e
topology: v6e:2x2x1
jax: 0.10.0
libtpu: 0.0.40
codegen_flags: <defaults>
</compile_context>

<pallas_src>
import functools
import math

import jax
import jax.numpy as jnp
from jax import lax
from jax.experimental import pallas as pl
from jax.experimental.pallas import tpu as pltpu

EPS = 1e-5


def _cdiv(a, b):
    return (a + b - 1) // b


def _round_up(x, m):
    return ((x + m - 1) // m) * m


# ---------------------------------------------------------------------------
# Phase 1: per-feature sum and sum-of-squares.
# Grid = (C cores, feature_tiles, row_tiles); row axis last & "arbitrary".
# Outputs are (C, 1, Hf); each core accumulates its own partial row.
# ---------------------------------------------------------------------------
def _stats_kernel(x_ref, sum_ref, sq_ref, *, rn, rc, n_rows, needs_mask):
    i = pl.program_id(2)

    @pl.when(i == 0)
    def _():
        sum_ref[...] = jnp.zeros_like(sum_ref)
        sq_ref[...] = jnp.zeros_like(sq_ref)

    x = x_ref[...].astype(jnp.float32)                    # (rn, th)
    if needs_mask:
        c = pl.program_id(0)
        row0 = (c * rc + i) * rn
        rows = row0 + lax.broadcasted_iota(jnp.int32, (x.shape[0], 1), 0)
        x = jnp.where(rows < n_rows, x, 0.0)              # zero padded tail rows
    sum_ref[...] += jnp.sum(x, axis=0, keepdims=True)
    sq_ref[...] += jnp.sum(x * x, axis=0, keepdims=True)


# ---------------------------------------------------------------------------
# Phase 2: elementwise apply y = x * scale + shift.
# ---------------------------------------------------------------------------
def _apply_kernel(x_ref, scale_ref, shift_ref, o_ref):
    x = x_ref[...].astype(jnp.float32)                    # (rn, th)
    o_ref[...] = (x * scale_ref[...] + shift_ref[...]).astype(o_ref.dtype)


@jax.jit
def batch_norm_last_dim(x, gamma, beta):
    """x: (B, L, H); gamma, beta: (H,). Returns (B, L, H)."""
    B, L, H = x.shape
    N = B * L
    dtype = x.dtype
    itemsize = jnp.dtype(dtype).itemsize
    sub = {4: 8, 2: 16, 1: 32}.get(itemsize, 8)           # packed sublane multiple

    # ---- Small-H lane folding: (N, H) -> (N/k, k*H), a free contiguous view.
    k = 1
    if H < 128:
        kk = 128 // math.gcd(H, 128)
        if kk > 1 and N % kk == 0:
            k = kk
    Nf, Hf = N // k, k * H
    x2 = x.reshape(Nf, Hf)

    # ---- Feature tile: lane-dense multiple of 128 if possible, else full dim.
    th = min(Hf, 512) if Hf % 128 == 0 else Hf
    F = _cdiv(Hf, th)

    # ---- Row tile: ~2 MiB blocks, balanced across tiles, sublane-aligned.
    target_rows = min(2048, max(sub, (1 << 21) // max(1, th * itemsize)))
    n_row_tiles = max(1, _cdiv(Nf, target_rows))
    rn = min(_round_up(_cdiv(Nf, n_row_tiles), sub), _round_up(Nf, sub))
    R = _cdiv(Nf, rn)

    # ---- Split the reduction across (up to) 2 TensorCores.
    C = 2 if R >= 2 else 1
    Rc = _cdiv(R, C)
    needs_mask = (Nf % rn != 0) or (R != C * Rc)

    vmem_limit = 32 * 1024 * 1024
    cparams_stats = pltpu.CompilerParams(
        dimension_semantics=("parallel", "parallel", "arbitrary"),
        vmem_limit_bytes=vmem_limit)
    cparams_apply = pltpu.CompilerParams(
        dimension_semantics=("parallel", "parallel"),
        vmem_limit_bytes=vmem_limit)

    if R == C * Rc:
        def x_map(c, j, i):
            return (c * Rc + i, j)
    else:
        def x_map(c, j, i):
            # Clamp so the trailing (fully out-of-range) block on the last core
            # re-reads a valid block; its rows are masked out in the kernel.
            return (jnp.minimum(c * Rc + i, R - 1), j)

    stats_kernel = functools.partial(
        _stats_kernel, rn=rn, rc=Rc, n_rows=Nf, needs_mask=needs_mask)

    # ---- Phase 1: accumulate per-feature statistics -------------------------
    sum_p, sq_p = pl.pallas_call(
        stats_kernel,
        out_shape=(jax.ShapeDtypeStruct((C, 1, Hf), jnp.float32),
                   jax.ShapeDtypeStruct((C, 1, Hf), jnp.float32)),
        grid_spec=pltpu.PrefetchScalarGridSpec(
            num_scalar_prefetch=0,
            grid=(C, F, Rc),
            in_specs=[pl.BlockSpec((rn, th), x_map)],
            out_specs=[pl.BlockSpec((None, 1, th), lambda c, j, i: (c, 0, j)),
                       pl.BlockSpec((None, 1, th), lambda c, j, i: (c, 0, j))],
        ),
        compiler_params=cparams_stats,
    )(x2)

    # ---- Tiny O(H) epilogue in plain JAX -------------------------------------
    n = jnp.float32(N)
    sum_h = sum_p.reshape(C, k, H).sum(axis=(0, 1))        # (H,)
    sq_h = sq_p.reshape(C, k, H).sum(axis=(0, 1))
    mean = sum_h / n
    # TODO(synk): E[x^2]-mean^2 loses precision when |mean| >> std; a centered
    # second reduction pass would be numerically safer for such data.
    var = jnp.maximum(sq_h / n - mean * mean, 0.0)         # biased variance
    inv_std = lax.rsqrt(var + EPS)
    scale_h = gamma.astype(jnp.float32) * inv_std
    shift_h = beta.astype(jnp.float32) - mean * scale_h
    scale = jnp.tile(scale_h, k)[None, :]                  # (1, Hf)
    shift = jnp.tile(shift_h, k)[None, :]                  # (1, Hf)

    # ---- Phase 2: fused scale/shift apply ------------------------------------
    out2 = pl.pallas_call(
        _apply_kernel,
        out_shape=jax.ShapeDtypeStruct((Nf, Hf), dtype),
        grid_spec=pltpu.PrefetchScalarGridSpec(
            num_scalar_prefetch=0,
            grid=(_cdiv(Nf, rn), F),
            in_specs=[pl.BlockSpec((rn, th), lambda i, j: (i, j)),
                      pl.BlockSpec((1, th), lambda i, j: (0, j)),
                      pl.BlockSpec((1, th), lambda i, j: (0, j))],
            out_specs=pl.BlockSpec((rn, th), lambda i, j: (i, j)),
        ),
        compiler_params=cparams_apply,
    )(x2, scale, shift)

    return out2.reshape(B, L, H)


def _reference(x, gamma, beta):
    # Pure-JAX reference mirroring PyTorch BatchNorm1d (training mode).
    xf = x.astype(jnp.float32)
    mean = jnp.mean(xf, axis=(0, 1), keepdims=True)
    var = jnp.mean((xf - mean) ** 2, axis=(0, 1), keepdims=True)
    y = (xf - mean) / jnp.sqrt(var + EPS) * gamma + beta
    return y.astype(x.dtype)


if __name__ == "__main__":
    key = jax.random.PRNGKey(0)

    # Case 1: module-like small shape (H=32 < 128 exercises the lane-folding path).
    B, L, H = 2, 8, 32
    x = jax.random.normal(key, (B, L, H), dtype=jnp.float32)
    gamma = jnp.ones((H,), dtype=jnp.float32)   # fresh nn.BatchNorm1d params
    beta = jnp.zeros((H,), dtype=jnp.float32)

    out = batch_norm_last_dim(x, gamma, beta)
    jax.block_until_ready(out)
    ref = _reference(x, gamma, beta)
    assert out.shape == (B, L, H)
    assert jnp.allclose(out, ref, atol=1e-5, rtol=1e-5), "mismatch vs reference (fold path)"

    # Case 2: unaligned rows + non-128-multiple H (exercises tail masking, no-fold path).
    B2, L2, H2 = 3, 5, 160
    x2 = jax.random.normal(jax.random.PRNGKey(1), (B2, L2, H2), dtype=jnp.float32)
    gamma2 = jnp.ones((H2,), dtype=jnp.float32)
    beta2 = jnp.zeros((H2,), dtype=jnp.float32)

    out2 = batch_norm_last_dim(x2, gamma2, beta2)
    jax.block_until_ready(out2)
    ref2 = _reference(x2, gamma2, beta2)
    assert out2.shape == (B2, L2, H2)
    assert jnp.allclose(out2, ref2, atol=1e-5, rtol=1e-5), "mismatch vs reference (masked path)"

    print("KERNEL_OK")
</pallas_src>

<mosaic_0001>
module attributes {stable_mosaic.version = 11 : i64} {
  func.func @_stats_kernel(%arg0: i32, %arg1: i32, %arg2: i32, %arg3: memref<8x128xf32, #tpu.memory_space<vmem>>, %arg4: memref<1x1x128xf32, #tpu.memory_space<vmem>>, %arg5: memref<1x1x128xf32, #tpu.memory_space<vmem>>) attributes {dimension_semantics = [#tpu.dimension_semantics<parallel>, #tpu.dimension_semantics<parallel>, #tpu.dimension_semantics<arbitrary>], iteration_bounds = array<i64: 1, 1, 1>, scalar_prefetch = 0 : i64, scratch_operands = 0 : i64, tpu.core_type = #tpu.core_type<tc>, window_params = [{transform_indices = @transform_0, window_bounds = array<i64: 8, 128>}, {transform_indices = @transform_1, window_bounds = array<i64: 1, 1, 128>}, {transform_indices = @transform_2, window_bounds = array<i64: 1, 1, 128>}]} {
    %c0_i32 = arith.constant 0 : i32
    %0 = arith.cmpi eq, %arg2, %c0_i32 : i32
    %1 = arith.extui %0 : i1 to i32
    %c0_i32_0 = arith.constant 0 : i32
    %2 = arith.cmpi ne, %1, %c0_i32_0 : i32
    scf.if %2 {
      %cst_16 = arith.constant 0.000000e+00 : f32
      %33 = vector.broadcast %cst_16 : f32 to vector<1x128xf32>
      %c0_17 = arith.constant 0 : index
      %c0_18 = arith.constant 0 : index
      %c0_19 = arith.constant 0 : index
      %34 = vector.load %arg4[%c0_17, %c0_18, %c0_19] : memref<1x1x128xf32, #tpu.memory_space<vmem>>, vector<1x1x128xf32>
      %35 = vector.shape_cast %34 : vector<1x1x128xf32> to vector<1x128xf32>
      %36 = vector.shape_cast %33 : vector<1x128xf32> to vector<1x1x128xf32>
      tpu.vector_store %arg4[%c0_17, %c0_18, %c0_19], %36 {strides = array<i32>} : memref<1x1x128xf32, #tpu.memory_space<vmem>>, vector<1x1x128xf32>,
      %cst_20 = arith.constant 0.000000e+00 : f32
      %37 = vector.broadcast %cst_20 : f32 to vector<1x128xf32>
      %c0_21 = arith.constant 0 : index
      %c0_22 = arith.constant 0 : index
      %c0_23 = arith.constant 0 : index
      %38 = vector.load %arg5[%c0_21, %c0_22, %c0_23] : memref<1x1x128xf32, #tpu.memory_space<vmem>>, vector<1x1x128xf32>
      %39 = vector.shape_cast %38 : vector<1x1x128xf32> to vector<1x128xf32>
      %40 = vector.shape_cast %37 : vector<1x128xf32> to vector<1x1x128xf32>
      tpu.vector_store %arg5[%c0_21, %c0_22, %c0_23], %40 {strides = array<i32>} : memref<1x1x128xf32, #tpu.memory_space<vmem>>, vector<1x1x128xf32>,
    } else {
    }
    %c0 = arith.constant 0 : index
    %c0_1 = arith.constant 0 : index
    %3 = vector.load %arg3[%c0, %c0_1] : memref<8x128xf32, #tpu.memory_space<vmem>>, vector<8x128xf32>
    %c1_i32 = arith.constant 1 : i32
    %4 = arith.muli %arg0, %c1_i32 : i32
    %5 = arith.addi %4, %arg2 : i32
    %c8_i32 = arith.constant 8 : i32
    %6 = arith.muli %5, %c8_i32 : i32
    %7 = tpu.iota {dimensions = array<i32: 0>} : vector<8x1xi32>
    %8 = vector.broadcast %6 : i32 to vector<8x1xi32>
    %9 = arith.addi %8, %7 : vector<8x1xi32>
    %c4_i32 = arith.constant 4 : i32
    %10 = vector.broadcast %c4_i32 : i32 to vector<8x1xi32>
    %11 = arith.cmpi slt, %9, %10 : vector<8x1xi32>
    %cst = arith.constant 0.000000e+00 : f32
    %12 = vector.shape_cast %11 : vector<8x1xi1> to vector<8x1xi1>
    %13 = vector.broadcast %12 : vector<8x1xi1> to vector<8x128xi1>
    %14 = vector.broadcast %cst : f32 to vector<8x128xf32>
    %15 = arith.select %13, %3, %14 : vector<8x128xi1>, vector<8x128xf32>
    %c0_2 = arith.constant 0 : index
    %c0_3 = arith.constant 0 : index
    %c0_4 = arith.constant 0 : index
    %16 = vector.load %arg4[%c0_2, %c0_3, %c0_4] : memref<1x1x128xf32, #tpu.memory_space<vmem>>, vector<1x1x128xf32>
    %17 = vector.shape_cast %16 : vector<1x1x128xf32> to vector<1x128xf32>
    %cst_5 = arith.constant dense<0.000000e+00> : vector<128xf32>
    %18 = vector.multi_reduction <add>, %15, %cst_5 [0] : vector<8x128xf32> to vector<128xf32>
    %19 = vector.shape_cast %18 : vector<128xf32> to vector<1x128xf32>
    %20 = arith.addf %17, %19 : vector<1x128xf32>
    %c0_6 = arith.constant 0 : index
    %c0_7 = arith.constant 0 : index
    %c0_8 = arith.constant 0 : index
    %21 = vector.load %arg4[%c0_6, %c0_7, %c0_8] : memref<1x1x128xf32, #tpu.memory_space<vmem>>, vector<1x1x128xf32>
    %22 = vector.shape_cast %21 : vector<1x1x128xf32> to vector<1x128xf32>
    %23 = vector.shape_cast %20 : vector<1x128xf32> to vector<1x1x128xf32>
    tpu.vector_store %arg4[%c0_6, %c0_7, %c0_8], %23 {strides = array<i32>} : memref<1x1x128xf32, #tpu.memory_space<vmem>>, vector<1x1x128xf32>,
    %c0_9 = arith.constant 0 : index
    %c0_10 = arith.constant 0 : index
    %c0_11 = arith.constant 0 : index
    %24 = vector.load %arg5[%c0_9, %c0_10, %c0_11] : memref<1x1x128xf32, #tpu.memory_space<vmem>>, vector<1x1x128xf32>
    %25 = vector.shape_cast %24 : vector<1x1x128xf32> to vector<1x128xf32>
    %26 = arith.mulf %15, %15 : vector<8x128xf32>
    %cst_12 = arith.constant dense<0.000000e+00> : vector<128xf32>
    %27 = vector.multi_reduction <add>, %26, %cst_12 [0] : vector<8x128xf32> to vector<128xf32>
    %28 = vector.shape_cast %27 : vector<128xf32> to vector<1x128xf32>
    %29 = arith.addf %25, %28 : vector<1x128xf32>
    %c0_13 = arith.constant 0 : index
    %c0_14 = arith.constant 0 : index
    %c0_15 = arith.constant 0 : index
    %30 = vector.load %arg5[%c0_13, %c0_14, %c0_15] : memref<1x1x128xf32, #tpu.memory_space<vmem>>, vector<1x1x128xf32>
    %31 = vector.shape_cast %30 : vector<1x1x128xf32> to vector<1x128xf32>
    %32 = vector.shape_cast %29 : vector<1x128xf32> to vector<1x1x128xf32>
    tpu.vector_store %arg5[%c0_13, %c0_14, %c0_15], %32 {strides = array<i32>} : memref<1x1x128xf32, #tpu.memory_space<vmem>>, vector<1x1x128xf32>,
    return
  }
  func.func @transform_0(%arg0: i32, %arg1: i32, %arg2: i32) -> (i32, i32) {
    %c1_i32 = arith.constant 1 : i32
    %0 = arith.muli %arg0, %c1_i32 : i32
    %1 = arith.addi %0, %arg2 : i32
    %c0_i32 = arith.constant 0 : i32
    return %1, %arg1 : i32, i32
  }
  func.func @transform_1(%arg0: i32, %arg1: i32, %arg2: i32) -> (i32, i32, i32) {
    %c0_i32 = arith.constant 0 : i32
    %c0_i32_0 = arith.constant 0 : i32
    return %arg0, %c0_i32, %arg1 : i32, i32, i32
  }
  func.func @transform_2(%arg0: i32, %arg1: i32, %arg2: i32) -> (i32, i32, i32) {
    %c0_i32 = arith.constant 0 : i32
    %c0_i32_0 = arith.constant 0 : i32
    return %arg0, %c0_i32, %arg1 : i32, i32, i32
  }
}

module attributes {stable_mosaic.version = 11 : i64} {
  func.func @_apply_kernel(%arg0: i32, %arg1: i32, %arg2: memref<8x128xf32, #tpu.memory_space<vmem>>, %arg3: memref<1x128xf32, #tpu.memory_space<vmem>>, %arg4: memref<1x128xf32, #tpu.memory_space<vmem>>, %arg5: memref<8x128xf32, #tpu.memory_space<vmem>>) attributes {dimension_semantics = [#tpu.dimension_semantics<parallel>, #tpu.dimension_semantics<parallel>], iteration_bounds = array<i64: 1, 1>, scalar_prefetch = 0 : i64, scratch_operands = 0 : i64, tpu.core_type = #tpu.core_type<tc>, window_params = [{transform_indices = @transform_0, window_bounds = array<i64: 8, 128>}, {transform_indices = @transform_1, window_bounds = array<i64: 1, 128>}, {transform_indices = @transform_2, window_bounds = array<i64: 1, 128>}, {transform_indices = @transform_3, window_bounds = array<i64: 8, 128>}]} {
    %c0 = arith.constant 0 : index
    %c0_0 = arith.constant 0 : index
    %0 = vector.load %arg2[%c0, %c0_0] : memref<8x128xf32, #tpu.memory_space<vmem>>, vector<8x128xf32>
    %c0_1 = arith.constant 0 : index
    %c0_2 = arith.constant 0 : index
    %1 = vector.load %arg3[%c0_1, %c0_2] : memref<1x128xf32, #tpu.memory_space<vmem>>, vector<1x128xf32>
    %2 = vector.broadcast %1 : vector<1x128xf32> to vector<8x128xf32>
    %3 = arith.mulf %0, %2 : vector<8x128xf32>
    %c0_3 = arith.constant 0 : index
    %c0_4 = arith.constant 0 : index
    %4 = vector.load %arg4[%c0_3, %c0_4] : memref<1x128xf32, #tpu.memory_space<vmem>>, vector<1x128xf32>
    %5 = vector.broadcast %4 : vector<1x128xf32> to vector<8x128xf32>
    %6 = arith.addf %3, %5 : vector<8x128xf32>
    %c0_5 = arith.constant 0 : index
    %c0_6 = arith.constant 0 : index
    %7 = vector.load %arg5[%c0_5, %c0_6] : memref<8x128xf32, #tpu.memory_space<vmem>>, vector<8x128xf32>
    tpu.vector_store %arg5[%c0_5, %c0_6], %6 {strides = array<i32>} : memref<8x128xf32, #tpu.memory_space<vmem>>, vector<8x128xf32>,
    return
  }
  func.func @transform_0(%arg0: i32, %arg1: i32) -> (i32, i32) {
    %c0_i32 = arith.constant 0 : i32
    return %arg0, %arg1 : i32, i32
  }
  func.func @transform_1(%arg0: i32, %arg1: i32) -> (i32, i32) {
    %c0_i32 = arith.constant 0 : i32
    %c0_i32_0 = arith.constant 0 : i32
    return %c0_i32, %arg1 : i32, i32
  }
  func.func @transform_2(%arg0: i32, %arg1: i32) -> (i32, i32) {
    %c0_i32 = arith.constant 0 : i32
    %c0_i32_0 = arith.constant 0 : i32
    return %c0_i32, %arg1 : i32, i32
  }
  func.func @transform_3(%arg0: i32, %arg1: i32) -> (i32, i32) {
    %c0_i32 = arith.constant 0 : i32
    return %arg0, %arg1 : i32, i32
  }
}

</mosaic_0001>

<bundles_post_ra>
// kernel: tile.19
= control target key start
LH: loop header
LB: loop body
LE: loop exit
PB: predicated region body
PF: predicated region fallthrough
CT: control target
= control target key end

     0   :  { %vm8_vm0 = vcmask 261120   ;;  %s40_s8 = smov 32   ;;  %s41_s9 = smov 64   ;;  %vm14_vm1 = vcmask 1048320   ;;  %vm20_vm2 = vcmask 785920   ;;  %vm26_vm3 = vcmask 523520   ;;  %s58_s0 = inlined_call_operand.vmem [shape: f32[4,32], index: 0, kind: input, shape index: {}]   ;;  %s59_s1 = inlined_call_operand.vmem [shape: f32[1,128], index: 1, kind: output, shape index: {}]  }
   0x1   :  { %v5_v0 = vld [vmem:[%s58_s0] sm:$0xf]  ;;  %s39_s0 = smov 96  }
   0x2   :  { %6 = vst [vmem:[#allocation1] sm:$0xf] %v5_v0 }
   0x9   :  { %v11_v1 = vld [vmem:[#allocation1 + $0x3] sm:$0x1]   ;;  %v23_v2 = vld [vmem:[#allocation1 + $0x1] sm:$0x1]   ;;  %v7_v3 = vld [vmem:[#allocation1] sm:$0x1]  }
   0xa   :  { %12 = vrot.lane.b32.xlu0 %v11_v1, %s39_s0  ;;  %24 = vrot.lane.b32.xlu1 %v23_v2, %s40_s8  ;;  %v17_v4 = vld [vmem:[#allocation1 + $0x2] sm:$0x1]   ;;  %9 = vst.msk [vmem:[#allocation0] sm:$0x1] %vm8_vm0, %v7_v3  }
   0xe   :  { %18 = vrot.lane.b32.xlu0 %v17_v4, %s41_s9 }
  0x7c   :  { %v13_v5 = vpop.permute.xlu0 %12   ;;  %v25_v6 = vpop.permute.xlu1 %24  }
  0x7d   :  { %15 = vst.msk [vmem:[#allocation0] sm:$0x1] %vm14_vm1, %v13_v5  }
  0x80   :  { %v19_v7 = vpop.permute.xlu0 %18  }
  0x81   :  { %21 = vst.msk [vmem:[#allocation0] sm:$0x1] %vm20_vm2, %v19_v7  }
  0x82   :  { %27 = vst.msk [vmem:[#allocation0] sm:$0x1] %vm26_vm3, %v25_v6  }
  0x89   :  { %v32_v8 = vld [vmem:[#allocation0] sm:$0x1] }
  0x8a   :  { %35 = vst [vmem:[%s59_s1] sm:$0x1] %v32_v8 }

// kernel: tile.18
= control target key start
LH: loop header
LB: loop body
LE: loop exit
PB: predicated region body
PF: predicated region fallthrough
CT: control target
= control target key end

     0   :  { %s22_s0 = inlined_call_operand.vmem [shape: f32[32], index: 0, kind: input, shape index: {}]   ;;  %s23_s1 = inlined_call_operand.vmem [shape: f32[4,32], index: 1, kind: output, shape index: {}]  }
   0x1   :  { %v4_v0 = vld [vmem:[%s22_s0] ss:$0 sm:$0xff] }
   0x2   :  { %5 = vst [vmem:[%s23_s1] sm:$0xf] %v4_v0 }

// kernel: batch_norm_last_dim.2
= control target key start
LH: loop header
LB: loop body
LE: loop exit
PB: predicated region body
PF: predicated region fallthrough
CT: control target
= control target key end

     0   :  { %v94_v0 = vmov 0.0   ;;  %s131_s1 = inlined_call_operand.vmem [shape: f32[1,1,128], index: 1, kind: output, shape index: {0}]   ;;  %s132_s2 = inlined_call_operand.vmem [shape: f32[1,1,128], index: 2, kind: output, shape index: {1}]   ;;  %s133_s0 = inlined_call_operand.vmem [shape: f32[4,128], index: 0, kind: input, shape index: {}]  }
   0x1   :  { %46 = vst [vmem:[%s131_s1] sm:$0x1] %v94_v0  ;;  %47 = vst [vmem:[%s132_s2] sm:$0x1] %v94_v0  ;;  %v92_v1 = vld [vmem:[%s133_s0] sm:$0xf] }
   0x2   :  { %v60_v2 = vrot.slane %v92_v1, 4  ;;  %v69_v3 = vmul.f32 %v92_v1, %v92_v1 }
   0x4   :  { %v61_v4 = vadd.f32 %v92_v1, %v60_v2  ;;  %v70_v5 = vrot.slane %v69_v3, 4 }
   0x6   :  { %v62_v6 = vrot.slane %v61_v4, 2  ;;  %v71_v7 = vadd.f32 %v70_v5, %v69_v3 }
   0x8   :  { %v63_v8 = vadd.f32 %v62_v6, %v61_v4  ;;  %v72_v9 = vrot.slane %v71_v7, 2  ;;  %v59_v12 = vld [vmem:[%s131_s1] sm:$0x1] }
   0x9   :  { %v68_v15 = vld [vmem:[%s132_s2] sm:$0x1] }
   0xa   :  { %v64_v10 = vrot.slane %v63_v8, 1  ;;  %v73_v11 = vadd.f32 %v72_v9, %v71_v7 }
   0xc   :  { %v65_v13 = vadd.f32 %v64_v10, %v63_v8  ;;  %v74_v14 = vrot.slane %v73_v11, 1 }
   0xe   :  { %v66_v16 = vadd.f32 %v65_v13, %v59_v12  ;;  %v75_v17 = vadd.f32 %v74_v14, %v73_v11 }
  0x10   :  { %67 = vst [vmem:[%s131_s1] sm:$0x1] %v66_v16  ;;  %v76_v18 = vadd.f32 %v75_v17, %v68_v15 }
  0x12   :  { %77 = vst [vmem:[%s132_s2] sm:$0x1] %v76_v18 }

// kernel: batch_norm_last_dim.3
= control target key start
LH: loop header
LB: loop body
LE: loop exit
PB: predicated region body
PF: predicated region fallthrough
CT: control target
= control target key end

     0   :  { %s107_s0 = inlined_call_operand.vmem [shape: f32[4,128], index: 0, kind: input, shape index: {}]   ;;  %s108_s1 = inlined_call_operand.vmem [shape: f32[1,128], index: 1, kind: input, shape index: {}]   ;;  %s109_s2 = inlined_call_operand.vmem [shape: f32[1,128], index: 2, kind: input, shape index: {}]   ;;  %s110_s3 = inlined_call_operand.vmem [shape: f32[4,128], index: 3, kind: output, shape index: {}]  }
   0x1   :  { %v14_v0 = vld [vmem:[%s107_s0] sm:$0xff] }
   0x2   :  { %v73_v1 = vld [vmem:[%s108_s1] ss:$0 sm:$0xff] }
   0x3   :  { %v74_v2 = vld [vmem:[%s109_s2] ss:$0 sm:$0xff]  ;;  %v22_v3 = vmul.f32 %v73_v1, %v14_v0 }
   0x5   :  { %v30_v4 = vadd.f32 %v74_v2, %v22_v3 }
   0x7   :  { %31 = vst [vmem:[#allocation2] sm:$0xff] %v30_v4 }
   0xe   :  { %v50_v5 = vld [vmem:[#allocation2] sm:$0xf] }
   0xf   :  { %51 = vst [vmem:[%s110_s3] sm:$0xf] %v50_v5 }

</bundles_post_ra>
